<compile_context>
chip_gen: v7x
topology: tpu7x:2x2x1
jax: 0.10.0
libtpu: 0.0.40
codegen_flags: <defaults>
</compile_context>

<pallas_src>
import functools

import jax
import jax.numpy as jnp
from jax import lax
from jax.experimental import pallas as pl
from jax.experimental.pallas import tpu as pltpu


C_OUT = 256          # fixed by the module: Conv2d(2, 256, 3, stride=3, padding=3)
_MAX_T_HW = 4096     # 256 * 4096 * 4 B = 4 MiB output block; x2 buffers fits all gens


# -----------------------------------------------------------------------------
# Kernel: folded rank-1 conv + per-channel bias, NCHW-contiguous output.
#   o[0, c, hw] = sum_k p[0, k, hw] * w[k, 0]  +  bias[c, 0]
# -----------------------------------------------------------------------------
def _fold_conv_kernel(p_ref, w_ref, bias_ref, o_ref):
    # p_ref   : (1, K, t_hw)     f32  transposed im2col patches for this tile
    # w_ref   : (K, 1)           f32  folded rank-1 weight  W1^T . other
    # bias_ref: (C_OUT, 1)       f32  folded bias  (b1 . other) + other
    # o_ref   : (1, C_OUT, t_hw) f32  NCHW-contiguous output tile (lane-dense)
    s = jnp.sum(p_ref[0] * w_ref[...], axis=0, keepdims=True)   # (1, t_hw)
    o_ref[...] = (s + bias_ref[...])[None]                       # (1, C_OUT, t_hw)


def _choose_t_hw(hw):
    # Full-dim block (always legal) when it fits comfortably -> single grid
    # step per image on single-TC chips; otherwise 128-aligned tiles whose
    # ragged tail is masked automatically.
    if hw <= _MAX_T_HW:
        return hw
    return _MAX_T_HW


def _folded_conv(patches_t, w_eff, bias_col, hw):
    """patches_t: [N, K, HW] f32, w_eff: [K, 1] f32, bias_col: [C_OUT, 1] f32."""
    n, k, _ = patches_t.shape
    t_hw = _choose_t_hw(hw)
    grid = (n, pl.cdiv(hw, t_hw))

    return pl.pallas_call(
        _fold_conv_kernel,
        out_shape=jax.ShapeDtypeStruct((n, C_OUT, hw), jnp.float32),
        grid_spec=pltpu.PrefetchScalarGridSpec(
            num_scalar_prefetch=0,
            grid=grid,
            in_specs=[
                pl.BlockSpec((1, k, t_hw), lambda i, j: (i, 0, j)),
                pl.BlockSpec((k, 1), lambda i, j: (0, 0)),
                pl.BlockSpec((C_OUT, 1), lambda i, j: (0, 0)),
            ],
            out_specs=pl.BlockSpec((1, C_OUT, t_hw), lambda i, j: (i, 0, j)),
        ),
        compiler_params=pltpu.CompilerParams(
            dimension_semantics=("parallel", "parallel")),
    )(patches_t, w_eff, bias_col)


# -----------------------------------------------------------------------------
# im2col producing channel-major patches [N, C*kh*kw, Ho*Wo] (feature order
# (C, kh, kw)).  Fast path for stride == kernel (non-overlapping windows).
# -----------------------------------------------------------------------------
def _im2col_transposed(x, kh, kw, stride, pad):
    n, c, h, w = x.shape
    ho = (h + 2 * pad - kh) // stride + 1
    wo = (w + 2 * pad - kw) // stride + 1
    xp = jnp.pad(x, ((0, 0), (0, 0), (pad, pad), (pad, pad)))
    if kh == stride and kw == stride:
        # Non-overlapping windows: pad -> crop -> reshape -> transpose.
        xc = xp[:, :, :ho * stride, :wo * stride]
        xc = xc.reshape(n, c, ho, kh, wo, kw)
        pt = xc.transpose(0, 1, 3, 5, 2, 4).reshape(n, c * kh * kw, ho * wo)
    else:
        # General fallback (unused for this module's fixed k=stride=3 config).
        cols = []
        for i in range(kh):
            for j in range(kw):
                cols.append(xp[:, :, i:i + ho * stride:stride,
                                   j:j + wo * stride:stride])   # [N, C, Ho, Wo]
        pt = jnp.stack(cols, axis=2)                            # [N, C, kh*kw, Ho, Wo]
        pt = pt.reshape(n, c * kh * kw, ho * wo)
    return pt, ho, wo


# -----------------------------------------------------------------------------
# Full forward pass
# -----------------------------------------------------------------------------
@functools.partial(jax.jit, static_argnames=())
def model_forward(x, w1, b1, other):
    # x:     [N, 2, H, W]    (NCHW, like PyTorch)
    # w1:    [256, 2, 3, 3]  conv1 weight
    # b1:    [256]           conv1 bias
    # other: [1, 256, 1, 1]  second conv weight / broadcast-add term
    _, c_in, _, _ = x.shape
    k = c_in * 9

    patches_t, ho, wo = _im2col_transposed(x, 3, 3, stride=3, pad=3)  # [N, K, HW] f32
    ov = other.reshape(C_OUT)                                         # [256]

    # Algebraic fold of the 1-output-channel 1x1 conv + broadcast add (all f32):
    #   v2 = P . (W1^T.ov) + b1.ov ;  v3 = v2 + ov  (per channel)
    w_eff = jnp.einsum('oihw,o->ihw', w1, ov,
                       precision=lax.Precision.HIGHEST).reshape(k, 1)  # [18, 1]
    b_eff = jnp.dot(b1, ov, precision=lax.Precision.HIGHEST)           # scalar
    bias_col = (b_eff + ov).reshape(C_OUT, 1)                          # [256, 1]

    v3_flat = _folded_conv(patches_t, w_eff, bias_col, ho * wo)        # [N, 256, HW]
    # NCHW-contiguous already -> reshape is metadata-only.
    return v3_flat.reshape(-1, C_OUT, ho, wo)


# -----------------------------------------------------------------------------
# Pure-JAX reference (for sanity checking)
# -----------------------------------------------------------------------------
def reference_forward(x, w1, b1, other):
    v1 = lax.conv_general_dilated(
        x, w1, window_strides=(3, 3), padding=((3, 3), (3, 3)),
        dimension_numbers=("NCHW", "OIHW", "NCHW"),
        precision=lax.Precision.HIGHEST)
    v1 = v1 + b1.reshape(1, -1, 1, 1)
    v2 = lax.conv_general_dilated(
        v1, other, window_strides=(1, 1), padding=((0, 0), (0, 0)),
        dimension_numbers=("NCHW", "OIHW", "NCHW"),
        precision=lax.Precision.HIGHEST)                         # [N, 1, Ho, Wo]
    v3 = v2 + other.reshape(1, -1, 1, 1)                         # -> [N, 256, Ho, Wo]
    return v3


if __name__ == "__main__":
    key = jax.random.PRNGKey(0)
    k1, k2, k3, k4 = jax.random.split(key, 4)

    # small shapes: batch=2, in_channels=2 (fixed by module), spatial=18
    N, C_in, H, W = 2, 2, 18, 18

    x = jax.random.normal(k1, (N, C_in, H, W), dtype=jnp.float32)
    w1 = jax.random.normal(k2, (C_OUT, C_in, 3, 3), dtype=jnp.float32) * 0.1
    b1 = jax.random.normal(k3, (C_OUT,), dtype=jnp.float32) * 0.1
    other = jax.random.normal(k4, (1, C_OUT, 1, 1), dtype=jnp.float32) * 0.05

    out = jax.block_until_ready(model_forward(x, w1, b1, other))
    ref = jax.block_until_ready(reference_forward(x, w1, b1, other))

    assert out.shape == ref.shape, (out.shape, ref.shape)
    assert jnp.allclose(out, ref, rtol=1e-3, atol=1e-3), float(
        jnp.max(jnp.abs(out - ref)))

    print("KERNEL_OK")
</pallas_src>

<mosaic_0001>
module attributes {stable_mosaic.version = 11 : i64} {
  func.func @_fold_conv_kernel(%arg0: i32, %arg1: i32, %arg2: memref<1x18x64xf32, #tpu.memory_space<vmem>>, %arg3: memref<18x1xf32, #tpu.memory_space<vmem>>, %arg4: memref<256x1xf32, #tpu.memory_space<vmem>>, %arg5: memref<1x256x64xf32, #tpu.memory_space<vmem>>) attributes {dimension_semantics = [#tpu.dimension_semantics<parallel>, #tpu.dimension_semantics<parallel>], iteration_bounds = array<i64: 2, 1>, scalar_prefetch = 0 : i64, scratch_operands = 0 : i64, tpu.core_type = #tpu.core_type<tc>, window_params = [{transform_indices = @transform_0, window_bounds = array<i64: 1, 18, 64>}, {pipeline_mode = #tpu.pipeline_mode<synchronous>, transform_indices = @transform_1, window_bounds = array<i64: 18, 1>}, {pipeline_mode = #tpu.pipeline_mode<synchronous>, transform_indices = @transform_2, window_bounds = array<i64: 256, 1>}, {transform_indices = @transform_3, window_bounds = array<i64: 1, 256, 64>}]} {
    %c0 = arith.constant 0 : index
    %c0_0 = arith.constant 0 : index
    %c0_1 = arith.constant 0 : index
    %0 = vector.load %arg2[%c0, %c0_0, %c0_1] : memref<1x18x64xf32, #tpu.memory_space<vmem>>, vector<1x18x64xf32>
    %1 = vector.shape_cast %0 : vector<1x18x64xf32> to vector<18x64xf32>
    %c0_2 = arith.constant 0 : index
    %c0_3 = arith.constant 0 : index
    %2 = vector.load %arg3[%c0_2, %c0_3] : memref<18x1xf32, #tpu.memory_space<vmem>>, vector<18x1xf32>
    %3 = vector.broadcast %2 : vector<18x1xf32> to vector<18x64xf32>
    %4 = arith.mulf %1, %3 : vector<18x64xf32>
    %cst = arith.constant dense<0.000000e+00> : vector<64xf32>
    %5 = vector.multi_reduction <add>, %4, %cst [0] : vector<18x64xf32> to vector<64xf32>
    %6 = vector.shape_cast %5 : vector<64xf32> to vector<1x64xf32>
    %c0_4 = arith.constant 0 : index
    %c0_5 = arith.constant 0 : index
    %7 = vector.load %arg4[%c0_4, %c0_5] : memref<256x1xf32, #tpu.memory_space<vmem>>, vector<256x1xf32>
    %8 = vector.broadcast %6 : vector<1x64xf32> to vector<256x64xf32>
    %9 = vector.broadcast %7 : vector<256x1xf32> to vector<256x64xf32>
    %10 = arith.addf %8, %9 : vector<256x64xf32>
    %11 = vector.shape_cast %10 : vector<256x64xf32> to vector<1x256x64xf32>
    %c0_6 = arith.constant 0 : index
    %c0_7 = arith.constant 0 : index
    %c0_8 = arith.constant 0 : index
    %12 = vector.load %arg5[%c0_6, %c0_7, %c0_8] : memref<1x256x64xf32, #tpu.memory_space<vmem>>, vector<1x256x64xf32>
    tpu.vector_store %arg5[%c0_6, %c0_7, %c0_8], %11 {strides = array<i32>} : memref<1x256x64xf32, #tpu.memory_space<vmem>>, vector<1x256x64xf32>,
    return
  }
  func.func @transform_0(%arg0: i32, %arg1: i32) -> (i32, i32, i32) {
    %c0_i32 = arith.constant 0 : i32
    %c0_i32_0 = arith.constant 0 : i32
    return %arg0, %c0_i32, %arg1 : i32, i32, i32
  }
  func.func @transform_1(%arg0: i32, %arg1: i32) -> (i32, i32) {
    %c0_i32 = arith.constant 0 : i32
    %c0_i32_0 = arith.constant 0 : i32
    %c0_i32_1 = arith.constant 0 : i32
    return %c0_i32, %c0_i32_0 : i32, i32
  }
  func.func @transform_2(%arg0: i32, %arg1: i32) -> (i32, i32) {
    %c0_i32 = arith.constant 0 : i32
    %c0_i32_0 = arith.constant 0 : i32
    %c0_i32_1 = arith.constant 0 : i32
    return %c0_i32, %c0_i32_0 : i32, i32
  }
  func.func @transform_3(%arg0: i32, %arg1: i32) -> (i32, i32, i32) {
    %c0_i32 = arith.constant 0 : i32
    %c0_i32_0 = arith.constant 0 : i32
    return %arg0, %c0_i32, %arg1 : i32, i32, i32
  }
}

</mosaic_0001>

<bundles_post_ra>
// kernel: model_forward.1
= control target key start
LH: loop header
LB: loop body
LE: loop exit
PB: predicated region body
PF: predicated region fallthrough
CT: control target
= control target key end

     0   :  { %s662_s12 = smov 0   ;;  %s664_s13 = smov 0   ;;  %s910_s0 = inlined_call_operand.vmem [shape: f32[2,18,64], index: 0, kind: input, shape index: {}]   ;;  %s911_s1 = inlined_call_operand.vmem [shape: f32[18,1], index: 1, kind: input, shape index: {}]   ;;  %s912_s2 = inlined_call_operand.vmem [shape: f32[256,1], index: 2, kind: input, shape index: {}]   ;;  %s913_s3 = inlined_call_operand.vmem [shape: f32[2,256,64], index: 3, kind: output, shape index: {}]  }
   0x1   :  { %s666_s14 = smov 0  }
   0x2 LB: > { %s25_s15 = sadd.s32 1, %s635_s13  ;;  %p582_p0 = scmp.ge.s32.totalorder %s639_s14, 1  ;;  %s639_s14 = sphi %s666_s14, %s13_s14   ;;  %s635_s13 = sphi %s664_s13, %s915_s13   ;;  %s631_s12 = sphi %s662_s12, %s914_s12  }
   0x3   : > { %p27_p1 = scmp.ge.s32.totalorder %s25_s15, 2  ;;  %p156_p2 = scmp.lt.s32.totalorder %s639_s14, 3 }
   0x5   : > { %s917_s15 = smov (%p27_p1, %s25_s15), 0  ;;  %p157_p3 = pnand %p582_p0, %p156_p2 }
   0x6   : > { %v207_v0 = vld [vmem:[%s911_s1 + $0x10] sm:$0x3] (!%p157_p3)  ;;  %v205_v1 = vld [vmem:[%s911_s1] sm:$0xff] (!%p157_p3)  ;;  %v641_v2 = vmov (!%p157_p3), 0   ;;  %v206_v4 = vld [vmem:[%s911_s1 + $0x8] sm:$0xff] (!%p157_p3)  ;;  %p186_p4 = scmp.lt.s32.totalorder (!%p157_p3), %s631_s12, 1 }
   0x7   : > { %160 = sbr.rel (%p157_p3) target bundleno = 207 (0xcf), region = 32  ;;  %616 = vset.pattern.permute.xlu1 (!%p157_p3), %v641_v2  ;;  %615 = vset.pattern.permute.xlu0 (!%p157_p3), %v641_v2  ;;  %v239_v3 = vld [vmem:[%s912_s2] sm:$0xff] (!%p157_p3)  ;;  %v241_v5 = vld [vmem:[%s912_s2 + $0x10] sm:$0xff] (!%p157_p3)  ;;  %v240_v6 = vld [vmem:[%s912_s2 + $0x8] sm:$0xff] (!%p157_p3)  ;;  %vm226_vm0 = vcmask (!%p157_p3), 523264   ;;  %vm230_vm1 = vcmask (!%p157_p3), 517120  }
   0x8   : > { %220 = vperm.xlu1 (!%p157_p3), %616, %v207_v0   ;;  %210 = vperm.xlu0 (!%p157_p3), %615, %v205_v1   ;;  %v243_v7 = vld [vmem:[%s912_s2 + $0x20] sm:$0xff] (!%p157_p3)  ;;  %v242_v8 = vld [vmem:[%s912_s2 + $0x18] sm:$0xff] (!%p157_p3)  ;;  %v245_v9 = vld [vmem:[%s912_s2 + $0x30] sm:$0xff] (!%p157_p3) }
   0x9   : > { %v244_v10 = vld [vmem:[%s912_s2 + $0x28] sm:$0xff] (!%p157_p3)  ;;  %v247_v11 = vld [vmem:[%s912_s2 + $0x40] sm:$0xff] (!%p157_p3)  ;;  %v246_v12 = vld [vmem:[%s912_s2 + $0x38] sm:$0xff] (!%p157_p3) }
   0xa   : > { %v249_v13 = vld [vmem:[%s912_s2 + $0x50] sm:$0xff] (!%p157_p3)  ;;  %v248_v14 = vld [vmem:[%s912_s2 + $0x48] sm:$0xff] (!%p157_p3)  ;;  %v251_v15 = vld [vmem:[%s912_s2 + $0x60] sm:$0xff] (!%p157_p3) }
   0xb   : > { %v250_v16 = vld [vmem:[%s912_s2 + $0x58] sm:$0xff] (!%p157_p3)  ;;  %v253_v17 = vld [vmem:[%s912_s2 + $0x70] sm:$0xff] (!%p157_p3)  ;;  %v252_v18 = vld [vmem:[%s912_s2 + $0x68] sm:$0xff] (!%p157_p3) }
   0xc   : > { %273 = vperm.xlu1 (!%p157_p3), %616, %v239_v3   ;;  %215 = vperm.xlu0 (!%p157_p3), %615, %v206_v4   ;;  %v255_v19 = vld [vmem:[%s912_s2 + $0x80] sm:$0xff] (!%p157_p3)  ;;  %v254_v20 = vld [vmem:[%s912_s2 + $0x78] sm:$0xff] (!%p157_p3)  ;;  %v257_v21 = vld [vmem:[%s912_s2 + $0x90] sm:$0xff] (!%p157_p3) }
   0xd   : > { %v256_v22 = vld [vmem:[%s912_s2 + $0x88] sm:$0xff] (!%p157_p3)  ;;  %v259_v23 = vld [vmem:[%s912_s2 + $0xa0] sm:$0xff] (!%p157_p3)  ;;  %v258_v24 = vld [vmem:[%s912_s2 + $0x98] sm:$0xff] (!%p157_p3) }
   0xe   : > { %v261_v25 = vld [vmem:[%s912_s2 + $0xb0] sm:$0xff]  ;;  %v260_v26 = vld [vmem:[%s912_s2 + $0xa8] sm:$0xff]  ;;  %v263_v27 = vld [vmem:[%s912_s2 + $0xc0] sm:$0xff]  ;;  %s919_s12 = smov (!%p186_p4, %s631_s12), 1 }
   0xf   : > { %v262_v28 = vld [vmem:[%s912_s2 + $0xb8] sm:$0xff]  ;;  %v265_v29 = vld [vmem:[%s912_s2 + $0xd0] sm:$0xff]  ;;  %v264_v30 = vld [vmem:[%s912_s2 + $0xc8] sm:$0xff]  ;;  %s589_s17 = smul.u32 24, %s919_s12  ;;  %s588_s21 = sshll.u32 %s919_s12, 8 }
  0x10   : > { %283 = vperm.xlu1 %616, %v241_v5   ;;  %278 = vperm.xlu0 %615, %v240_v6   ;;  %v267_v31 = vld [vmem:[%s912_s2 + $0xe0] sm:$0xff]  ;;  %v266_v32 = vld [vmem:[%s912_s2 + $0xd8] sm:$0xff]  ;;  %v269_v33 = vld [vmem:[%s912_s2 + $0xf0] sm:$0xff]  ;;  %s803_s24 = scalar_lea.vmem %s913_s3, %s588_s21 }
  0x11   : > { %v268_v34 = vld [vmem:[%s912_s2 + $0xe8] sm:$0xff]  ;;  %v270_v35 = vld [vmem:[%s912_s2 + $0xf8] sm:$0xff]  ;;  %s193_s20 = scalar_lea.vmem %s910_s0, %s589_s17 }
  0x12   : > { %v202_v38 = vld [vmem:[%s193_s20] sm:$0xff]  ;;  %v204_v39 = vld [vmem:[%s193_s20 + $0x10] sm:$0x3]  ;;  %v203_v40 = vld [vmem:[%s193_s20 + $0x8] sm:$0xff] }
  0x14   : > { %293 = vperm.xlu1 %616, %v243_v7   ;;  %288 = vperm.xlu0 %615, %v242_v8  }
  0x18   : > { %303 = vperm.xlu1 %616, %v245_v9   ;;  %298 = vperm.xlu0 %615, %v244_v10  }
  0x1c   : > { %313 = vperm.xlu1 %616, %v247_v11   ;;  %308 = vperm.xlu0 %615, %v246_v12  }
  0x20   : > { %323 = vperm.xlu1 %616, %v249_v13   ;;  %318 = vperm.xlu0 %615, %v248_v14  }
  0x24   : > { %333 = vperm.xlu1 %616, %v251_v15   ;;  %328 = vperm.xlu0 %615, %v250_v16  }
  0x28   : > { %343 = vperm.xlu1 %616, %v253_v17   ;;  %338 = vperm.xlu0 %615, %v252_v18  }
  0x2c   : > { %353 = vperm.xlu1 %616, %v255_v19   ;;  %348 = vperm.xlu0 %615, %v254_v20  }
  0x30   : > { %363 = vperm.xlu1 %616, %v257_v21   ;;  %358 = vperm.xlu0 %615, %v256_v22  }
  0x34   : > { %373 = vperm.xlu1 %616, %v259_v23   ;;  %368 = vperm.xlu0 %615, %v258_v24  }
  0x38   : > { %383 = vperm.xlu1 %616, %v261_v25   ;;  %378 = vperm.xlu0 %615, %v260_v26  }
  0x3c   : > { %393 = vperm.xlu1 %616, %v263_v27   ;;  %388 = vperm.xlu0 %615, %v262_v28  }
  0x40   : > { %403 = vperm.xlu1 %616, %v265_v29   ;;  %398 = vperm.xlu0 %615, %v264_v30  }
  0x44   : > { %413 = vperm.xlu1 %616, %v267_v31   ;;  %408 = vperm.xlu0 %615, %v266_v32  }
  0x48   : > { %423 = vperm.xlu1 %616, %v269_v33   ;;  %418 = vperm.xlu0 %615, %v268_v34  }
  0x4c   : > { %428 = vperm.xlu0 %615, %v270_v35  }
  0x87   : > { %v221_v36 = vpop.permute.xlu1 %220  ;;  %v211_v37 = vpop.permute.xlu0 %210 }
  0x88   : > { %v223_v41 = vmul.f32 %v211_v37, %v202_v38  ;;  %v225_v44 = vmul.f32 %v221_v36, %v204_v39 }
  0x8a   : > { %v227_v46 = vsel %vm226_vm0, %v223_v41, 0.0  ;;  %v231_v51 = vsel %vm230_vm1, %v225_v44, 0.0 }
  0x8b   : > { %v274_v42 = vpop.permute.xlu1 %273  ;;  %v216_v43 = vpop.permute.xlu0 %215 }
  0x8c   : > { %v224_v45 = vmul.f32 %v216_v43, %v203_v40 }
  0x8e   : > { %v228_v47 = vsel %vm226_vm0, %v224_v45, 0.0 }
  0x8f   : > { %v229_v48 = vadd.f32 %v228_v47, %v227_v46  ;;  %v284_v49 = vpop.permute.xlu1 %283  ;;  %v279_v50 = vpop.permute.xlu0 %278 }
  0x91   : > { %v232_v52 = vadd.f32 %v231_v51, %v229_v48 }
  0x93   : > { %v233_v53 = vrot.slane %v232_v52, 4  ;;  %v294_v54 = vpop.permute.xlu1 %293  ;;  %v289_v55 = vpop.permute.xlu0 %288 }
  0x95   : > { %v234_v56 = vadd.f32 %v233_v53, %v232_v52 }
  0x97   : > { %v235_v57 = vrot.slane %v234_v56, 2  ;;  %v304_v58 = vpop.permute.xlu1 %303  ;;  %v299_v59 = vpop.permute.xlu0 %298 }
  0x99   : > { %v236_v60 = vadd.f32 %v235_v57, %v234_v56 }
  0x9b   : > { %v237_v61 = vrot.slane %v236_v60, 1  ;;  %v314_v62 = vpop.permute.xlu1 %313  ;;  %v309_v63 = vpop.permute.xlu0 %308 }
  0x9d   : > { %v798_v0 = vadd.f32 %v237_v61, %v236_v60 }
  0x9f   : > { %v431_v1 = vadd.f32 %v274_v42, %v798_v0  ;;  %v433_v2 = vadd.f32 %v284_v49, %v798_v0  ;;  %v432_v3 = vadd.f32 %v279_v50, %v798_v0  ;;  %v435_v4 = vadd.f32 %v294_v54, %v798_v0  ;;  %v324_v5 = vpop.permute.xlu1 %323  ;;  %v319_v6 = vpop.permute.xlu0 %318 }
  0xa0   : > { %v434_v7 = vadd.f32 %v289_v55, %v798_v0  ;;  %v437_v8 = vadd.f32 %v304_v58, %v798_v0  ;;  %v436_v9 = vadd.f32 %v299_v59, %v798_v0  ;;  %v439_v10 = vadd.f32 %v314_v62, %v798_v0 }
  0xa1   : > { %463 = vst.msk [vmem:[%s803_s24] sm:$0xff] %vm226_vm0, %v431_v1  ;;  %465 = vst.msk [vmem:[%s803_s24 + $0x10] sm:$0xff] %vm226_vm0, %v433_v2  ;;  %v438_v11 = vadd.f32 %v309_v63, %v798_v0  ;;  %v441_v12 = vadd.f32 %v324_v5, %v798_v0  ;;  %v440_v13 = vadd.f32 %v319_v6, %v798_v0 }
  0xa2   : > { %464 = vst.msk [vmem:[%s803_s24 + $0x8] sm:$0xff] %vm226_vm0, %v432_v3  ;;  %467 = vst.msk [vmem:[%s803_s24 + $0x20] sm:$0xff] %vm226_vm0, %v435_v4 }
  0xa3   : > { %466 = vst.msk [vmem:[%s803_s24 + $0x18] sm:$0xff] %vm226_vm0, %v434_v7  ;;  %469 = vst.msk [vmem:[%s803_s24 + $0x30] sm:$0xff] %vm226_vm0, %v437_v8  ;;  %v334_v14 = vpop.permute.xlu1 %333  ;;  %v329_v15 = vpop.permute.xlu0 %328 }
  0xa4   : > { %468 = vst.msk [vmem:[%s803_s24 + $0x28] sm:$0xff] %vm226_vm0, %v436_v9  ;;  %471 = vst.msk [vmem:[%s803_s24 + $0x40] sm:$0xff] %vm226_vm0, %v439_v10  ;;  %v443_v16 = vadd.f32 %v334_v14, %v798_v0  ;;  %v442_v17 = vadd.f32 %v329_v15, %v798_v0 }
  0xa5   : > { %470 = vst.msk [vmem:[%s803_s24 + $0x38] sm:$0xff] %vm226_vm0, %v438_v11  ;;  %473 = vst.msk [vmem:[%s803_s24 + $0x50] sm:$0xff] %vm226_vm0, %v441_v12 }
  0xa6   : > { %472 = vst.msk [vmem:[%s803_s24 + $0x48] sm:$0xff] %vm226_vm0, %v440_v13  ;;  %475 = vst.msk [vmem:[%s803_s24 + $0x60] sm:$0xff] %vm226_vm0, %v443_v16 }
  0xa7   : > { %474 = vst.msk [vmem:[%s803_s24 + $0x58] sm:$0xff] %vm226_vm0, %v442_v17  ;;  %v344_v18 = vpop.permute.xlu1 %343  ;;  %v339_v19 = vpop.permute.xlu0 %338 }
  0xa8   : > { %v445_v20 = vadd.f32 %v344_v18, %v798_v0  ;;  %v444_v21 = vadd.f32 %v339_v19, %v798_v0 }
  0xaa   : > { %477 = vst.msk [vmem:[%s803_s24 + $0x70] sm:$0xff] %vm226_vm0, %v445_v20  ;;  %476 = vst.msk [vmem:[%s803_s24 + $0x68] sm:$0xff] %vm226_vm0, %v444_v21 }
  0xab   : > { %v354_v22 = vpop.permute.xlu1 %353  ;;  %v349_v23 = vpop.permute.xlu0 %348 }
  0xac   : > { %v447_v24 = vadd.f32 %v354_v22, %v798_v0  ;;  %v446_v25 = vadd.f32 %v349_v23, %v798_v0 }
  0xae   : > { %479 = vst.msk [vmem:[%s803_s24 + $0x80] sm:$0xff] %vm226_vm0, %v447_v24  ;;  %478 = vst.msk [vmem:[%s803_s24 + $0x78] sm:$0xff] %vm226_vm0, %v446_v25 }
  0xaf   : > { %v364_v26 = vpop.permute.xlu1 %363  ;;  %v359_v27 = vpop.permute.xlu0 %358 }
  0xb0   : > { %v449_v28 = vadd.f32 %v364_v26, %v798_v0  ;;  %v448_v29 = vadd.f32 %v359_v27, %v798_v0 }
  0xb2   : > { %481 = vst.msk [vmem:[%s803_s24 + $0x90] sm:$0xff] %vm226_vm0, %v449_v28  ;;  %480 = vst.msk [vmem:[%s803_s24 + $0x88] sm:$0xff] %vm226_vm0, %v448_v29 }
  0xb3   : > { %v374_v30 = vpop.permute.xlu1 %373  ;;  %v369_v31 = vpop.permute.xlu0 %368 }
  0xb4   : > { %v451_v32 = vadd.f32 %v374_v30, %v798_v0  ;;  %v450_v33 = vadd.f32 %v369_v31, %v798_v0 }
  0xb6   : > { %483 = vst.msk [vmem:[%s803_s24 + $0xa0] sm:$0xff] %vm226_vm0, %v451_v32  ;;  %482 = vst.msk [vmem:[%s803_s24 + $0x98] sm:$0xff] %vm226_vm0, %v450_v33 }
  0xb7   : > { %v384_v34 = vpop.permute.xlu1 %383  ;;  %v379_v35 = vpop.permute.xlu0 %378 }
  0xb8   : > { %v453_v36 = vadd.f32 %v384_v34, %v798_v0  ;;  %v452_v37 = vadd.f32 %v379_v35, %v798_v0 }
  0xba   : > { %485 = vst.msk [vmem:[%s803_s24 + $0xb0] sm:$0xff] %vm226_vm0, %v453_v36  ;;  %484 = vst.msk [vmem:[%s803_s24 + $0xa8] sm:$0xff] %vm226_vm0, %v452_v37 }
  0xbb   : > { %v394_v38 = vpop.permute.xlu1 %393  ;;  %v389_v39 = vpop.permute.xlu0 %388 }
  0xbc   : > { %v455_v40 = vadd.f32 %v394_v38, %v798_v0  ;;  %v454_v41 = vadd.f32 %v389_v39, %v798_v0 }
  0xbe   : > { %487 = vst.msk [vmem:[%s803_s24 + $0xc0] sm:$0xff] %vm226_vm0, %v455_v40  ;;  %486 = vst.msk [vmem:[%s803_s24 + $0xb8] sm:$0xff] %vm226_vm0, %v454_v41 }
  0xbf   : > { %v404_v42 = vpop.permute.xlu1 %403  ;;  %v399_v43 = vpop.permute.xlu0 %398 }
  0xc0   : > { %v457_v44 = vadd.f32 %v404_v42, %v798_v0  ;;  %v456_v45 = vadd.f32 %v399_v43, %v798_v0 }
  0xc2   : > { %489 = vst.msk [vmem:[%s803_s24 + $0xd0] sm:$0xff] %vm226_vm0, %v457_v44  ;;  %488 = vst.msk [vmem:[%s803_s24 + $0xc8] sm:$0xff] %vm226_vm0, %v456_v45 }
  0xc3   : > { %v414_v46 = vpop.permute.xlu1 %413  ;;  %v409_v47 = vpop.permute.xlu0 %408 }
  0xc4   : > { %v459_v48 = vadd.f32 %v414_v46, %v798_v0  ;;  %v458_v49 = vadd.f32 %v409_v47, %v798_v0 }
  0xc6   : > { %491 = vst.msk [vmem:[%s803_s24 + $0xe0] sm:$0xff] %vm226_vm0, %v459_v48  ;;  %490 = vst.msk [vmem:[%s803_s24 + $0xd8] sm:$0xff] %vm226_vm0, %v458_v49 }
  0xc7   : > { %v424_v50 = vpop.permute.xlu1 %423  ;;  %v419_v51 = vpop.permute.xlu0 %418 }
  0xc8   : > { %v461_v52 = vadd.f32 %v424_v50, %v798_v0  ;;  %v460_v53 = vadd.f32 %v419_v51, %v798_v0 }
  0xca   : > { %493 = vst.msk [vmem:[%s803_s24 + $0xf0] sm:$0xff] %vm226_vm0, %v461_v52  ;;  %492 = vst.msk [vmem:[%s803_s24 + $0xe8] sm:$0xff] %vm226_vm0, %v460_v53 }
  0xcb   : > { %v429_v54 = vpop.permute.xlu0 %428 }
  0xcc   : > { %v462_v55 = vadd.f32 %v429_v54, %v798_v0 }
  0xce   : > { %494 = vst.msk [vmem:[%s803_s24 + $0xf8] sm:$0xff] %vm226_vm0, %v462_v55 }
  0xcf PF: > { %s13_s14 = sadd.s32 1, %s639_s14   ;;  %s914_s12 = smov %s635_s13 }
  0xd0   : > { %p10_p5 = scmp.ge.s32.totalorder %s13_s14, 4   ;;  %s915_s13 = smov %s917_s15 }
  0xd2   :  { %12 = sbr.rel (!%p10_p5) target bundleno = 2 (0x2), region = 62 }

</bundles_post_ra>
